<compile_context>
chip_gen: v5e
topology: v5e:2x2
jax: 0.10.0
libtpu: 0.0.40
codegen_flags: <defaults>
</compile_context>

<pallas_src>
import math
from functools import partial
from typing import Dict, Any, List, Tuple

import numpy as np
import jax
import jax.numpy as jnp
from jax.experimental import pallas as pl
from jax.experimental.pallas import tpu as pltpu


_TG_CAP = 256    # groups per tile (MXU M)
_TS_CAP = 256    # sequence columns per tile (MXU K / reduction)
_TH_CAP = 2048   # hidden columns per tile (MXU N / lanes)


def _round_up(x: int, m: int) -> int:
    return ((x + m - 1) // m) * m


def _pick_tile(dim: int, align: int, cap: int) -> int:
    """Largest multiple of `align` that divides `dim` and is <= cap."""
    best = align
    t = align
    limit = min(dim, max(cap, align))
    while t <= limit:
        if dim % t == 0:
            best = t
        t += align
    return best


# ----------------------------------------------------------------------------
# Kernel: for one (b, g-tile, h-tile, s-step) grid point, synthesize the
# (tg, ts) indicator weight tile from group start/length and accumulate
# W @ X directly into the resident f32 output block; scale on the last step.
# ----------------------------------------------------------------------------
def _grouping_kernel(base_ref, nsteps_ref, start_ref, len_ref, scale_ref,
                     x_ref, o_ref, *, n_gt, compute_dtype):
    b = pl.program_id(0)
    g = pl.program_id(1)
    s = pl.program_id(3)
    idx = b * n_gt + g

    @pl.when(s == 0)
    def _init():
        o_ref[...] = jnp.zeros_like(o_ref)

    # Skip steps outside this g-tile's sequence span (weights would be zero).
    @pl.when(s < nsteps_ref[idx])
    def _accumulate():
        tg = start_ref.shape[0]
        ts = x_ref.shape[0]
        # Global column index of each element of the synthesized W tile,
        # derived from the *actually fetched* sequence block.
        col0 = (base_ref[idx] + s) * ts
        col = jax.lax.broadcasted_iota(jnp.int32, (tg, ts), 1) + col0
        # Single unsigned range check: start <= col < start + length.
        w = ((col - start_ref[...]).astype(jnp.uint32)
             < len_ref[...].astype(jnp.uint32)).astype(compute_dtype)
        o_ref[...] += jnp.dot(w, x_ref[...].astype(compute_dtype),
                              preferred_element_type=jnp.float32)

    @pl.when(s == pl.num_programs(3) - 1)
    def _finish():
        # per-group 1/g (mean) or 1.0 (sum), exact f32 post-scale.
        o_ref[...] *= scale_ref[...]


# ----------------------------------------------------------------------------
# pallas_call wrapper (jitted; tile sizes / span / output slice are static).
# ----------------------------------------------------------------------------
@partial(jax.jit, static_argnames=("out_g", "out_h", "ts", "th",
                                   "max_span", "compute_dtype"))
def _grouping_pallas(base, nsteps, start, length, scale, feats, *,
                     out_g, out_h, ts, th, max_span, compute_dtype):
    B, S, H = feats.shape
    G_pad = start.shape[1]
    n_gt = base.shape[0] // B
    tg = G_pad // n_gt
    S_pad = _round_up(S, ts)
    H_pad = _round_up(H, th)

    x = feats
    if (S_pad, H_pad) != (S, H):
        # Only pay the extra HBM pass when the shape is not tile-aligned.
        x = jnp.pad(x, ((0, 0), (0, S_pad - S), (0, H_pad - H)))

    grid = (B, n_gt, H_pad // th, max_span)
    kernel = partial(_grouping_kernel, n_gt=n_gt, compute_dtype=compute_dtype)

    def _meta_map(b, g, h, s, base_ref, nsteps_ref):
        return (b, g, 0)

    def _x_map(b, g, h, s, base_ref, nsteps_ref):
        idx = b * n_gt + g
        # Clamp residual (out-of-span) steps to the last in-span block so the
        # pipeline elides the redundant DMA (block index unchanged).
        last = jnp.maximum(nsteps_ref[idx] - 1, 0)
        return (b, base_ref[idx] + jnp.minimum(s, last), h)

    def _out_map(b, g, h, s, base_ref, nsteps_ref):
        return (b, g, h)

    out = pl.pallas_call(
        kernel,
        out_shape=jax.ShapeDtypeStruct((B, G_pad, H_pad), jnp.float32),
        grid_spec=pltpu.PrefetchScalarGridSpec(
            num_scalar_prefetch=2,
            grid=grid,
            in_specs=[
                pl.BlockSpec((pl.Squeezed(), tg, 1), _meta_map),   # start
                pl.BlockSpec((pl.Squeezed(), tg, 1), _meta_map),   # length
                pl.BlockSpec((pl.Squeezed(), tg, 1), _meta_map),   # scale
                pl.BlockSpec((pl.Squeezed(), ts, th), _x_map),     # X
            ],
            out_specs=pl.BlockSpec((pl.Squeezed(), tg, th), _out_map),
        ),
        compiler_params=pltpu.CompilerParams(
            dimension_semantics=("parallel", "parallel", "parallel",
                                 "arbitrary"),
            vmem_limit_bytes=48 * 1024 * 1024,
        ),
        cost_estimate=pl.CostEstimate(
            flops=2 * B * G_pad * H_pad * ts * max_span,
            transcendentals=0,
            bytes_accessed=(B * S_pad * H_pad * feats.dtype.itemsize
                            + B * G_pad * H_pad * 4
                            + 3 * B * G_pad * 4),
        ),
    )(base, nsteps, start, length, scale, x)

    if (G_pad, H_pad) != (out_g, out_h):
        out = out[:, :out_g, :out_h]
    return out


# ----------------------------------------------------------------------------
# Module-equivalent wrapper.
# ----------------------------------------------------------------------------
class Grouping:
    """JAX/Pallas equivalent of the PyTorch Grouping module."""

    def __init__(self, aggregation: str = "mean",
                 group_names: Tuple[str, ...] = ("groups",),
                 compute_dtype=jnp.bfloat16):
        assert aggregation in {"mean", "sum"}, \
            "aggregation must be either 'mean' or 'sum'"
        assert len(group_names) > 0, "need at least one group name"
        self.aggregation = aggregation
        self.group_names = tuple(group_names)
        self.compute_dtype = compute_dtype
        self._meta_cache: Dict[Any, Any] = {}

    def _metadata(self, groups: List[List[int]], ts: int, S_pad: int):
        key = (tuple(tuple(int(g) for g in grp) for grp in groups), ts, S_pad)
        cached = self._meta_cache.get(key)
        if cached is not None:
            return cached

        B = len(groups)
        G = max((len(grp) for grp in groups), default=1)
        G = max(G, 1)
        tg = min(_round_up(G, 8), _TG_CAP)
        G_pad = _round_up(G, tg)
        n_gt = G_pad // tg
        num_s_blocks = max(S_pad // ts, 1)

        start = np.zeros((B, G_pad, 1), np.int32)
        length = np.zeros((B, G_pad, 1), np.int32)
        scale = np.zeros((B, G_pad, 1), np.float32)
        mean = self.aggregation == "mean"
        for b, grp in enumerate(groups):
            off = 0
            for j, g in enumerate(grp):
                g = int(g)
                start[b, j, 0] = off
                length[b, j, 0] = g
                if g > 0:
                    scale[b, j, 0] = (1.0 / g) if mean else 1.0
                else:
                    scale[b, j, 0] = 0.0   # zero-length group -> zero row
                off += g

        # Per (batch, g-tile) span of sequence blocks actually touched.
        first_blk = np.zeros((B, n_gt), np.int64)
        last_blk = np.full((B, n_gt), -1, np.int64)
        for b in range(B):
            for t in range(n_gt):
                lo, hi = t * tg, (t + 1) * tg
                lens = length[b, lo:hi, 0]
                nz = lens > 0
                if nz.any():
                    sts = start[b, lo:hi, 0]
                    first_col = int(sts[nz].min())
                    last_col = int((sts[nz] + lens[nz]).max())  # exclusive
                    first_blk[b, t] = first_col // ts
                    last_blk[b, t] = min((last_col - 1) // ts,
                                         num_s_blocks - 1)
        span = np.where(last_blk >= 0, last_blk - first_blk + 1, 0)
        max_span = int(min(max(int(span.max()), 1), num_s_blocks))
        base = np.where(span > 0,
                        np.minimum(first_blk, num_s_blocks - max_span),
                        0).astype(np.int32)
        nsteps = np.where(span > 0, last_blk - base + 1, 0).astype(np.int32)

        meta = (jnp.asarray(start), jnp.asarray(length), jnp.asarray(scale),
                jnp.asarray(base.reshape(-1)), jnp.asarray(nsteps.reshape(-1)),
                G, max_span)
        self._meta_cache[key] = meta
        return meta

    def _apply_level(self, feats: jax.Array,
                     groups: List[List[int]]) -> jax.Array:
        B, S, H = feats.shape
        assert len(groups) == B, \
            f"got {len(groups)} group lists for batch size {B}"
        ts = min(_round_up(max(S, 1), 128), _TS_CAP)
        S_pad = _round_up(S, ts)
        start, length, scale, base, nsteps, G, max_span = \
            self._metadata(groups, ts, S_pad)
        n_gt = base.shape[0] // B

        H_pad = _round_up(max(H, 1), 128)
        th = _pick_tile(H_pad, 128, _TH_CAP)
        # v7x megacore: keep at least 2 blocks on some "parallel" axis.
        if B * n_gt * (H_pad // th) < 2 and H_pad >= 256:
            th = _pick_tile(H_pad, 128, H_pad // 2)

        return _grouping_pallas(base, nsteps, start, length, scale, feats,
                                out_g=G, out_h=H, ts=ts, th=th,
                                max_span=max_span,
                                compute_dtype=self.compute_dtype)

    def __call__(self, feats: jax.Array,
                 **kwargs) -> Tuple[jax.Array, List[int]]:
        assert feats.ndim == 3, \
            f"feats must have a shape of [B, S, H], but got {feats.shape}"
        assert all(gn in kwargs for gn in self.group_names), \
            f"expected groups {self.group_names} in kwargs, got {list(kwargs)}"
        all_groups = [kwargs[gn] for gn in self.group_names]
        group_lengths = [len(group) for group in all_groups[-1]]
        # Multi-level grouping == sequential application of single-level
        # grouping (mathematically identical to the sparse-matrix adaptation).
        out = feats
        for groups in all_groups:
            out = self._apply_level(out, groups)
        return out, group_lengths


# ----------------------------------------------------------------------------
# Reference (NumPy, f32) and demo.
# ----------------------------------------------------------------------------
def _dense_reference(feats_np: np.ndarray, groups: List[List[int]],
                     aggregation: str) -> np.ndarray:
    B, S, H = feats_np.shape
    G = max(len(g) for g in groups)
    out = np.zeros((B, G, H), np.float32)
    for b, group in enumerate(groups):
        off = 0
        for j, g in enumerate(group):
            if g > 0:
                seg = feats_np[b, off:off + g].astype(np.float32).sum(0)
                out[b, j] = seg / g if aggregation == "mean" else seg
            off += g
    return out


def _bf16_round(x: np.ndarray) -> np.ndarray:
    return np.asarray(jnp.asarray(x).astype(jnp.bfloat16).astype(jnp.float32))


if __name__ == "__main__":
    key = jax.random.PRNGKey(0)

    # --- small demo consistent with the module: [B, S, H] = [2, 8, 32] ------
    B, S, H = 2, 8, 32
    feats = jax.random.normal(key, (B, S, H), dtype=jnp.float32)
    groups = [[3, 4, 1], [2, 2, 2, 2]]          # per-batch group sizes

    g_mean = Grouping("mean")
    grouped, lengths = g_mean(feats, groups=groups)
    grouped = jax.block_until_ready(grouped)
    assert grouped.shape == (B, 4, H), grouped.shape
    assert lengths == [3, 4], lengths

    feats_np = np.asarray(feats)
    feats_q = _bf16_round(feats_np)             # kernel computes on bf16 input

    ref_mean = _dense_reference(feats_q, groups, "mean")
    np.testing.assert_allclose(np.asarray(grouped), ref_mean,
                               rtol=1e-4, atol=1e-4)

    # semantic spot checks vs full-precision f32 means (bf16 input tolerance)
    np.testing.assert_allclose(np.asarray(grouped[0, 0]),
                               feats_np[0, 0:3].mean(0), rtol=5e-2, atol=2e-2)
    np.testing.assert_allclose(np.asarray(grouped[1, 3]),
                               feats_np[1, 6:8].mean(0), rtol=5e-2, atol=2e-2)
    # shorter batch element is zero-padded (torch sparse->dense semantics)
    np.testing.assert_allclose(np.asarray(grouped[0, 3]), np.zeros(H),
                               atol=1e-6)

    # "sum" aggregation path
    g_sum = Grouping("sum")
    summed, _ = g_sum(feats, groups=groups)
    summed = jax.block_until_ready(summed)
    ref_sum = _dense_reference(feats_q, groups, "sum")
    np.testing.assert_allclose(np.asarray(summed), ref_sum,
                               rtol=1e-4, atol=1e-4)

    # --- multi-step S accumulation / span-restricted loop -------------------
    key2 = jax.random.PRNGKey(0)
    feats2 = jax.random.normal(key2, (1, 384, 128), dtype=jnp.float32)
    groups2 = [[100, 50, 234]]
    grouped2, lengths2 = g_mean(feats2, groups=groups2)
    grouped2 = jax.block_until_ready(grouped2)
    assert grouped2.shape == (1, 3, 128), grouped2.shape
    assert lengths2 == [3], lengths2
    ref2 = _dense_reference(_bf16_round(np.asarray(feats2)), groups2, "mean")
    np.testing.assert_allclose(np.asarray(grouped2), ref2,
                               rtol=2e-3, atol=2e-3)

    # --- multi-level grouping (two group names, applied sequentially) -------
    g_ml = Grouping("mean", group_names=("sub", "words"))
    sub = [[3, 4, 1], [2, 2, 2, 2]]
    words = [[2, 1], [1, 3]]
    ml_out, ml_lengths = g_ml(feats, sub=sub, words=words)
    ml_out = jax.block_until_ready(ml_out)
    assert ml_out.shape == (B, 2, H), ml_out.shape
    assert ml_lengths == [2, 2], ml_lengths
    lvl1 = _dense_reference(feats_q, sub, "mean")
    ref_ml = _dense_reference(_bf16_round(lvl1), words, "mean")
    np.testing.assert_allclose(np.asarray(ml_out), ref_ml,
                               rtol=2e-2, atol=2e-2)

    print("KERNEL_OK")
</pallas_src>

<mosaic_0001>
module attributes {stable_mosaic.version = 11 : i64} {
  func.func @_grouping_kernel(%arg0: i32, %arg1: i32, %arg2: i32, %arg3: i32, %arg4: memref<2xi32, #tpu.memory_space<smem>>, %arg5: memref<2xi32, #tpu.memory_space<smem>>, %arg6: memref<1x8x1xi32, #tpu.memory_space<vmem>>, %arg7: memref<1x8x1xi32, #tpu.memory_space<vmem>>, %arg8: memref<1x8x1xf32, #tpu.memory_space<vmem>>, %arg9: memref<1x128x128xf32, #tpu.memory_space<vmem>>, %arg10: memref<1x8x128xf32, #tpu.memory_space<vmem>>) attributes {dimension_semantics = [#tpu.dimension_semantics<parallel>, #tpu.dimension_semantics<parallel>, #tpu.dimension_semantics<parallel>, #tpu.dimension_semantics<arbitrary>], iteration_bounds = array<i64: 2, 1, 1, 1>, scalar_prefetch = 2 : i64, scratch_operands = 0 : i64, tpu.core_type = #tpu.core_type<tc>, window_params = [{transform_indices = @transform_0, window_bounds = array<i64: 1, 8, 1>}, {transform_indices = @transform_1, window_bounds = array<i64: 1, 8, 1>}, {transform_indices = @transform_2, window_bounds = array<i64: 1, 8, 1>}, {transform_indices = @transform_3, window_bounds = array<i64: 1, 128, 128>}, {transform_indices = @transform_4, window_bounds = array<i64: 1, 8, 128>}]} {
    %c1_i32 = arith.constant 1 : i32
    %0 = arith.muli %arg0, %c1_i32 : i32
    %1 = arith.addi %0, %arg1 : i32
    %c0_i32 = arith.constant 0 : i32
    %2 = arith.cmpi eq, %arg3, %c0_i32 : i32
    %3 = arith.extui %2 : i1 to i32
    %c0_i32_0 = arith.constant 0 : i32
    %4 = arith.cmpi ne, %3, %c0_i32_0 : i32
    scf.if %4 {
      %cst = arith.constant 0.000000e+00 : f32
      %13 = vector.broadcast %cst : f32 to vector<8x128xf32>
      %c0 = arith.constant 0 : index
      %c0_4 = arith.constant 0 : index
      %c0_5 = arith.constant 0 : index
      %14 = vector.load %arg10[%c0, %c0_4, %c0_5] : memref<1x8x128xf32, #tpu.memory_space<vmem>>, vector<1x8x128xf32>
      %15 = vector.shape_cast %14 : vector<1x8x128xf32> to vector<8x128xf32>
      %16 = vector.shape_cast %13 : vector<8x128xf32> to vector<1x8x128xf32>
      tpu.vector_store %arg10[%c0, %c0_4, %c0_5], %16 {strides = array<i32>} : memref<1x8x128xf32, #tpu.memory_space<vmem>>, vector<1x8x128xf32>,
    } else {
    }
    %5 = arith.index_cast %1 : i32 to index
    %6 = memref.load %arg5[%5] : memref<2xi32, #tpu.memory_space<smem>>
    %7 = arith.cmpi slt, %arg3, %6 : i32
    %8 = arith.extui %7 : i1 to i32
    %c0_i32_1 = arith.constant 0 : i32
    %9 = arith.cmpi ne, %8, %c0_i32_1 : i32
    scf.if %9 {
      %13 = arith.index_cast %1 : i32 to index
      %14 = memref.load %arg4[%13] : memref<2xi32, #tpu.memory_space<smem>>
      %15 = arith.addi %14, %arg3 : i32
      %c128_i32 = arith.constant 128 : i32
      %16 = arith.muli %15, %c128_i32 : i32
      %17 = tpu.iota {dimensions = array<i32: 1>} : vector<8x128xi32>
      %18 = vector.broadcast %16 : i32 to vector<8x128xi32>
      %19 = arith.addi %17, %18 : vector<8x128xi32>
      %c0 = arith.constant 0 : index
      %c0_4 = arith.constant 0 : index
      %c0_5 = arith.constant 0 : index
      %20 = vector.load %arg6[%c0, %c0_4, %c0_5] : memref<1x8x1xi32, #tpu.memory_space<vmem>>, vector<1x8x1xi32>
      %21 = vector.shape_cast %20 : vector<1x8x1xi32> to vector<8x1xi32>
      %22 = vector.broadcast %21 : vector<8x1xi32> to vector<8x128xi32>
      %23 = arith.subi %19, %22 : vector<8x128xi32>
      %c0_6 = arith.constant 0 : index
      %c0_7 = arith.constant 0 : index
      %c0_8 = arith.constant 0 : index
      %24 = vector.load %arg7[%c0_6, %c0_7, %c0_8] : memref<1x8x1xi32, #tpu.memory_space<vmem>>, vector<1x8x1xi32>
      %25 = vector.shape_cast %24 : vector<1x8x1xi32> to vector<8x1xi32>
      %26 = vector.broadcast %25 : vector<8x1xi32> to vector<8x128xi32>
      %27 = arith.cmpi ult, %23, %26 : vector<8x128xi32>
      %28 = arith.extui %27 : vector<8x128xi1> to vector<8x128xi32>
      %29 = arith.sitofp %28 : vector<8x128xi32> to vector<8x128xf32>
      %30 = arith.truncf %29 : vector<8x128xf32> to vector<8x128xbf16>
      %c0_9 = arith.constant 0 : index
      %c0_10 = arith.constant 0 : index
      %c0_11 = arith.constant 0 : index
      %31 = vector.load %arg10[%c0_9, %c0_10, %c0_11] : memref<1x8x128xf32, #tpu.memory_space<vmem>>, vector<1x8x128xf32>
      %32 = vector.shape_cast %31 : vector<1x8x128xf32> to vector<8x128xf32>
      %c0_12 = arith.constant 0 : index
      %c0_13 = arith.constant 0 : index
      %c0_14 = arith.constant 0 : index
      %33 = vector.load %arg9[%c0_12, %c0_13, %c0_14] : memref<1x128x128xf32, #tpu.memory_space<vmem>>, vector<1x128x128xf32>
      %34 = vector.shape_cast %33 : vector<1x128x128xf32> to vector<128x128xf32>
      %35 = arith.truncf %34 : vector<128x128xf32> to vector<128x128xbf16>
      %cst = arith.constant dense<0.000000e+00> : vector<8x128xf32>
      %36 = tpu.matmul %30, %35, %cst {dimension_numbers = #tpu.dot_dimension_numbers<[1], [0], [0], [1], [0, 0, 1, 1], [], []>} : vector<8x128xbf16>, vector<128x128xbf16>, vector<8x128xf32> -> vector<8x128xf32>
      %37 = arith.addf %32, %36 : vector<8x128xf32>
      %c0_15 = arith.constant 0 : index
      %c0_16 = arith.constant 0 : index
      %c0_17 = arith.constant 0 : index
      %38 = vector.load %arg10[%c0_15, %c0_16, %c0_17] : memref<1x8x128xf32, #tpu.memory_space<vmem>>, vector<1x8x128xf32>
      %39 = vector.shape_cast %38 : vector<1x8x128xf32> to vector<8x128xf32>
      %40 = vector.shape_cast %37 : vector<8x128xf32> to vector<1x8x128xf32>
      tpu.vector_store %arg10[%c0_15, %c0_16, %c0_17], %40 {strides = array<i32>} : memref<1x8x128xf32, #tpu.memory_space<vmem>>, vector<1x8x128xf32>,
    } else {
    }
    %c0_i32_2 = arith.constant 0 : i32
    %10 = arith.cmpi eq, %arg3, %c0_i32_2 : i32
    %11 = arith.extui %10 : i1 to i32
    %c0_i32_3 = arith.constant 0 : i32
    %12 = arith.cmpi ne, %11, %c0_i32_3 : i32
    scf.if %12 {
      %c0 = arith.constant 0 : index
      %c0_4 = arith.constant 0 : index
      %c0_5 = arith.constant 0 : index
      %13 = vector.load %arg10[%c0, %c0_4, %c0_5] : memref<1x8x128xf32, #tpu.memory_space<vmem>>, vector<1x8x128xf32>
      %14 = vector.shape_cast %13 : vector<1x8x128xf32> to vector<8x128xf32>
      %c0_6 = arith.constant 0 : index
      %c0_7 = arith.constant 0 : index
      %c0_8 = arith.constant 0 : index
      %15 = vector.load %arg8[%c0_6, %c0_7, %c0_8] : memref<1x8x1xf32, #tpu.memory_space<vmem>>, vector<1x8x1xf32>
      %16 = vector.shape_cast %15 : vector<1x8x1xf32> to vector<8x1xf32>
      %17 = vector.broadcast %16 : vector<8x1xf32> to vector<8x128xf32>
      %18 = arith.mulf %14, %17 : vector<8x128xf32>
      %c0_9 = arith.constant 0 : index
      %c0_10 = arith.constant 0 : index
      %c0_11 = arith.constant 0 : index
      %19 = vector.load %arg10[%c0_9, %c0_10, %c0_11] : memref<1x8x128xf32, #tpu.memory_space<vmem>>, vector<1x8x128xf32>
      %20 = vector.shape_cast %19 : vector<1x8x128xf32> to vector<8x128xf32>
      %21 = vector.shape_cast %18 : vector<8x128xf32> to vector<1x8x128xf32>
      tpu.vector_store %arg10[%c0_9, %c0_10, %c0_11], %21 {strides = array<i32>} : memref<1x8x128xf32, #tpu.memory_space<vmem>>, vector<1x8x128xf32>,
    } else {
    }
    return
  }
  func.func @transform_0(%arg0: i32, %arg1: i32, %arg2: i32, %arg3: i32, %arg4: memref<2xi32, #tpu.memory_space<smem>>, %arg5: memref<2xi32, #tpu.memory_space<smem>>) -> (i32, i32, i32) {
    %c0_i32 = arith.constant 0 : i32
    %c0_i32_0 = arith.constant 0 : i32
    return %arg0, %arg1, %c0_i32 : i32, i32, i32
  }
  func.func @transform_1(%arg0: i32, %arg1: i32, %arg2: i32, %arg3: i32, %arg4: memref<2xi32, #tpu.memory_space<smem>>, %arg5: memref<2xi32, #tpu.memory_space<smem>>) -> (i32, i32, i32) {
    %c0_i32 = arith.constant 0 : i32
    %c0_i32_0 = arith.constant 0 : i32
    return %arg0, %arg1, %c0_i32 : i32, i32, i32
  }
  func.func @transform_2(%arg0: i32, %arg1: i32, %arg2: i32, %arg3: i32, %arg4: memref<2xi32, #tpu.memory_space<smem>>, %arg5: memref<2xi32, #tpu.memory_space<smem>>) -> (i32, i32, i32) {
    %c0_i32 = arith.constant 0 : i32
    %c0_i32_0 = arith.constant 0 : i32
    return %arg0, %arg1, %c0_i32 : i32, i32, i32
  }
  func.func @transform_3(%arg0: i32, %arg1: i32, %arg2: i32, %arg3: i32, %arg4: memref<2xi32, #tpu.memory_space<smem>>, %arg5: memref<2xi32, #tpu.memory_space<smem>>) -> (i32, i32, i32) {
    %c1_i32 = arith.constant 1 : i32
    %0 = arith.muli %arg0, %c1_i32 : i32
    %1 = arith.addi %0, %arg1 : i32
    %2 = arith.index_cast %1 : i32 to index
    %3 = memref.load %arg5[%2] : memref<2xi32, #tpu.memory_space<smem>>
    %c1_i32_0 = arith.constant 1 : i32
    %4 = arith.subi %3, %c1_i32_0 : i32
    %c0_i32 = arith.constant 0 : i32
    %5 = arith.maxsi %4, %c0_i32 : i32
    %6 = arith.index_cast %1 : i32 to index
    %7 = memref.load %arg4[%6] : memref<2xi32, #tpu.memory_space<smem>>
    %8 = arith.minsi %arg3, %5 : i32
    %9 = arith.addi %7, %8 : i32
    %c0_i32_1 = arith.constant 0 : i32
    return %arg0, %9, %arg2 : i32, i32, i32
  }
  func.func @transform_4(%arg0: i32, %arg1: i32, %arg2: i32, %arg3: i32, %arg4: memref<2xi32, #tpu.memory_space<smem>>, %arg5: memref<2xi32, #tpu.memory_space<smem>>) -> (i32, i32, i32) {
    %c0_i32 = arith.constant 0 : i32
    return %arg0, %arg1, %arg2 : i32, i32, i32
  }
}

</mosaic_0001>

<bundles_post_ra>
// kernel: _grouping_pallas.1
= control target key start
LH: loop header
LB: loop body
LE: loop exit
PB: predicated region body
PF: predicated region fallthrough
CT: control target
= control target key end

     0   :  { %s772_s27 = smov [#allocation3]   ;;  %s773_s28 = smov [#allocation4]   ;;  %s910_s0 = inlined_call_operand.vmem [shape: s32[2], index: 0, kind: input, shape index: {}]   ;;  %s911_s2 = inlined_call_operand.vmem [shape: s32[2,8,1], index: 2, kind: input, shape index: {}]   ;;  %s912_s3 = inlined_call_operand.vmem [shape: s32[2,8,1], index: 3, kind: input, shape index: {}]   ;;  %s913_s4 = inlined_call_operand.vmem [shape: f32[2,8,1], index: 4, kind: input, shape index: {}]   ;;  %s914_s5 = inlined_call_operand.vmem [shape: f32[2,128,128], index: 5, kind: input, shape index: {}]   ;;  %s915_s6 = inlined_call_operand.vmem [shape: f32[2,8,128], index: 6, kind: output, shape index: {}]   ;;  %s916_s1 = inlined_call_operand.vmem [shape: s32[2], index: 1, kind: input, shape index: {}]  }
   0x1   :  { %s12_s23 = sshll.u32 %s910_s0, 4  ;;  %s17_s26 = sshll.u32 %s916_s1, 4  ;;  %s13_s23 = int_to_ptr.vmem [resolvable:$true] %s12_s23  ;;  %s18_s26 = int_to_ptr.vmem [resolvable:$true] %s17_s26 }
   0x2   :  { %15 = dma.vmem_to_smem %s13_s23, 16, %s772_s27, [#allocation2] }
   0x3   :  { %20 = dma.vmem_to_smem %s18_s26, 16, %s773_s28, [#allocation2] }
   0x4   :  { %758 = dma.done.wait [#allocation2], 32 }
   0x5   :  { %759 = vsyncadd [#allocation2], 4294967264 }
   0x6   :  { %23 = sfence }
   0x7   :  { %s819_s29 = smov 0   ;;  %s821_s30 = smov 0  }
   0x8   :  { %s823_s7 = smov 0  }
   0x9 LB: > { %s55_s0 = sadd.s32 1, %s766_s30  ;;  %p661_p0 = scmp.ge.s32.totalorder %s770_s7, 1  ;;  %s770_s7 = sphi %s823_s7, %s29_s7   ;;  %s766_s30 = sphi %s821_s30, %s918_s30   ;;  %s762_s29 = sphi %s819_s29, %s917_s29  }
   0xa   : > { %p57_p1 = scmp.ge.s32.totalorder %s55_s0, 2  ;;  %p297_p2 = scmp.lt.s32.totalorder %s770_s7, 3 }
   0xc   : > { %s920_s0 = smov (%p57_p1, %s55_s0), 0  ;;  %p298_p3 = pnand %p661_p0, %p297_p2 }
   0xd   : > { %p365_p4 = scmp.lt.s32.totalorder (!%p298_p3), %s762_s29, 1  ;;  %s387_s1 = sld [smem:[#allocation4 + %s762_s29]] (!%p298_p3) }
   0xe   : > { %301 = sbr.rel (%p298_p3) target bundleno = 417 (0x1a1), region = 36  ;;  %s433_s9 = sld [smem:[#allocation4 + %s762_s29]] (!%p298_p3) }
   0xf   : > { %s391_s11 = sld [smem:[#allocation3 + %s762_s29]] (!%p298_p3) }
  0x13   : > { %s366_s8 = scalar_select %p365_p4, %s762_s29, 1  ;;  %v774_v0 = vmov 0.0  }
  0x14   : > { %s665_s21 = sadd.s32 4294967295, %s387_s1  ;;  %p672_p7 = scmp.le.s32.totalorder %s433_s9, 0 }
  0x15   : > { %s843_s10 = sshll.u32 %s366_s8, 3  ;;  %p389_p5 = scmp.gt.s32.totalorder %s665_s21, 0 }
  0x16   : > { %s371_s14 = scalar_lea.vmem %s911_s2, %s843_s10  ;;  %s378_s17 = scalar_lea.vmem %s912_s3, %s843_s10 }
  0x17   : > { %s385_s20 = scalar_lea.vmem %s913_s4, %s843_s10  ;;  %s862_s24 = scalar_lea.vmem %s915_s6, %s843_s10 }
  0x18   : > { %432 = vst [vmem:[%s862_s24] sm:$0xff] %v774_v0  ;;  %s922_s21 = smov (!%p389_p5, %s665_s21), 0  ;;  %s668_s27 = sshll.u32 %s366_s8, 4 }
  0x19   : > { %s924_s21 = smov (%p389_p5, %s922_s21), 0 }
  0x1a   : > { %s394_s25 = sadd.s32 %s924_s21, %s391_s11  ;;  %s438_s11 = sld [smem:[#allocation3 + %s762_s29]] (!%p672_p7) }
  0x1b   : > { %s667_s26 = sshll.u32 %s394_s25, 4 }
  0x1c   : > { %p398_p6 = scmp.lt.s32.totalorder %s667_s26, 15 }
  0x1d   : > { %437 = sbr.rel (%p672_p7) target bundleno = 297 (0x129), region = 44 }
  0x1e   : > { %s926_s26 = smov (!%p398_p6, %s667_s26), 15 }
  0x1f   : > { %s404_s28 = sadd.s32 %s668_s27, %s926_s26 }
  0x20   : > { %s669_s12 = sshll.u32 %s404_s28, 3 }
  0x21   : > { %s868_s15 = scalar_lea.vmem %s914_s5, %s669_s12 }
  0x22   : > { %v445_v1 = vld [vmem:[%s371_s14] sm:$0xff]  ;;  %v475_v2 = vld [vmem:[%s868_s15 + $0x70] sm:$0xff]  ;;  %v775_v3 = vmov 0   ;;  %v476_v4 = vld [vmem:[%s868_s15 + $0x78] sm:$0xff]  ;;  %v441_v28 = vlaneseq  ;;  %s673_s14 = sshll.u32 %s438_s11, 7 }
  0x23   : > { %720 = vset.pattern.permute.xlu0 %v775_v3  ;;  %v473_v5 = vld [vmem:[%s868_s15 + $0x60] sm:$0xff]  ;;  %v474_v6 = vld [vmem:[%s868_s15 + $0x68] sm:$0xff]  ;;  %v484_v7 = vpack.c.bf16 %v476_v4, %v475_v2  ;;  %v471_v9 = vld [vmem:[%s868_s15 + $0x50] sm:$0xff]  ;;  %v443_v30 = vstv %s673_s14  ;;  %v776_v37 = vmov 1.0|1.0  }
  0x24   : > { %447 = vperm.xlu0 %720, %v445_v1   ;;  %v483_v8 = vpack.c.bf16 %v474_v6, %v473_v5  ;;  %v472_v10 = vld [vmem:[%s868_s15 + $0x58] sm:$0xff]  ;;  %v450_v11 = vld [vmem:[%s378_s17] sm:$0xff]  ;;  %v470_v14 = vld [vmem:[%s868_s15 + $0x48] sm:$0xff]  ;;  %v442_v29 = vand.u32 127, %v441_v28 }
  0x25   : > { %485 = vmatpush.bf16.msra.mxu0 %v484_v7  ;;  %v482_v12 = vpack.c.bf16 %v472_v10, %v471_v9  ;;  %v469_v13 = vld [vmem:[%s868_s15 + $0x40] sm:$0xff]  ;;  %v467_v16 = vld [vmem:[%s868_s15 + $0x30] sm:$0xff]  ;;  %v468_v17 = vld [vmem:[%s868_s15 + $0x38] sm:$0xff] }
  0x26   : > { %v481_v15 = vpack.c.bf16 %v470_v14, %v469_v13  ;;  %v480_v18 = vpack.c.bf16 %v468_v17, %v467_v16  ;;  %v465_v19 = vld [vmem:[%s868_s15 + $0x20] sm:$0xff]  ;;  %v466_v20 = vld [vmem:[%s868_s15 + $0x28] sm:$0xff]  ;;  %v463_v22 = vld [vmem:[%s868_s15 + $0x10] sm:$0xff]  ;;  %v444_v32 = vadd.s32 %v443_v30, %v442_v29 }
  0x27   : > { %v479_v21 = vpack.c.bf16 %v466_v20, %v465_v19  ;;  %v464_v23 = vld [vmem:[%s868_s15 + $0x18] sm:$0xff]  ;;  %v461_v25 = vld [vmem:[%s868_s15] sm:$0xff]  ;;  %v462_v26 = vld [vmem:[%s868_s15 + $0x8] sm:$0xff] }
  0x28   : > { %v478_v24 = vpack.c.bf16 %v464_v23, %v463_v22  ;;  %v477_v27 = vpack.c.bf16 %v462_v26, %v461_v25  ;;  %v460_v38 = vld [vmem:[%s862_s24] sm:$0xff] }
  0x29   : > { %486 = vmatpush.bf16.msra.mxu0 %v483_v8 }
  0x2c   : > { %452 = vperm.xlu0 %720, %v450_v11  }
  0x2d   : > { %487 = vmatpush.bf16.msra.mxu0 %v482_v12 }
  0x31   : > { %488 = vmatpush.bf16.msra.mxu0 %v481_v15 }
  0x35   : > { %489 = vmatpush.bf16.msra.mxu0 %v480_v18 }
  0x39   : > { %490 = vmatpush.bf16.msra.mxu0 %v479_v21 }
  0x3d   : > { %491 = vmatpush.bf16.msra.mxu0 %v478_v24 }
  0x41   : > { %492 = vmatpush.bf16.msra.mxu0 %v477_v27 }
  0x96   : > { %v448_v31 = vpop.permute.xlu0 %447 }
  0x97   : > { %v449_v33 = vsub.s32 %v444_v32, %v448_v31 }
  0x99   : > { %v674_v35 = vxor.u32 2147483648, %v449_v33 }
  0x9e   : > { %v453_v34 = vpop.permute.xlu0 %452 }
  0x9f   : > { %v675_v36 = vxor.u32 2147483648, %v453_v34 }
  0xa1   : > { %vm456_vm0 = vcmp.lt.s32.totalorder %v674_v35, %v675_v36 }
  0xa2   : > { %vm677_vm1 = vmpackc.low %vm456_vm0, %vm456_vm0 }
  0xa3   : > { %678 = vmatmul.msk.bf16.vlgmr.msra.gmra.mxu0 %vm677_vm1, %v776_v37 }
 0x120   : > { %v494_v39 = vpop.f32.mrf.mxu0 }
 0x121   : > { %v498_v40 = vadd.f32 %v494_v39, %v460_v38 }
 0x123   : > { %499 = vst [vmem:[%s862_s24] sm:$0xff] %v498_v40 }
 0x128   : > { %v496_v41 = vpop.f32.mrf.mxu0 }
 0x129 PF: > { %v504_v42 = vld [vmem:[%s385_s20] sm:$0xff]  ;;  %v777_v43 = vmov 0  }
 0x12a   : > { %721 = vset.pattern.permute.xlu0 %v777_v43  ;;  %v503_v44 = vld [vmem:[%s862_s24] sm:$0xff] }
 0x12b   : > { %507 = vperm.xlu0 %721, %v504_v42  }
 0x19d   : > { %v508_v45 = vpop.permute.xlu0 %507 }
 0x19e   : > { %v510_v46 = vmul.f32 %v508_v45, %v503_v44 }
 0x1a0   : > { %511 = vst [vmem:[%s862_s24] sm:$0xff] %v510_v46 }
 0x1a1 PF: > { %s29_s7 = sadd.s32 1, %s770_s7   ;;  %s917_s29 = smov %s766_s30 }
 0x1a2   : > { %p26_p8 = scmp.ge.s32.totalorder %s29_s7, 4   ;;  %s918_s30 = smov %s920_s0 }
 0x1a4   :  { %28 = sbr.rel (!%p26_p8) target bundleno = 9 (0x9), region = 87 }

</bundles_post_ra>
